<compile_context>
chip_gen: v5e
topology: v5e:2x2
jax: 0.10.0
libtpu: 0.0.40
codegen_flags: <defaults>
</compile_context>

<pallas_src>
import functools

import jax
import jax.numpy as jnp
from jax import lax
from jax.experimental import pallas as pl
from jax.experimental.pallas import tpu as pltpu


# ----------------------------------------------------------------------------
# Fused kernel: one batch element per grid step.
# ----------------------------------------------------------------------------
def fused_attention_kernel(x_ref, w_ref, b_ref, mstat_ref, ln_ref, o_ref, *,
                           num_heads, head_dim, eps):
    _, N, E = x_ref.shape
    H, D = num_heads, head_dim

    x = x_ref[0]                                            # (N, E)  bf16
    w = w_ref[...]                                          # (3E, E) bf16

    # x @ W^T : contract the LAST axis of both operands (no weight transpose
    # in HBM or on the XLU).  bf16 MXU inputs, f32 accumulation.
    qkv = lax.dot_general(x, w, (((1,), (1,)), ((), ())),
                          preferred_element_type=jnp.float32)
    qkv = qkv + b_ref[...]                                   # (N, 3E) f32

    q_all = qkv[:, :E]                                       # (N, E)
    k_all = qkv[:, E:2 * E]                                  # (N, E)
    v_all = qkv[:, 2 * E:]                                   # (N, E)

    mstat = mstat_ref[...]                                   # (E, E) f32

    def layer_norm_all_heads(t, gamma, beta):
        # Per-head LN statistics for every head in one shot: `t @ mstat`
        # (block-diagonal averaging matrix) places each head's mean in that
        # head's own lane block — all MXU, no masked per-head reductions.
        # Two-pass biased variance matches PyTorch LayerNorm; math is f32.
        mean = jnp.dot(t, mstat, preferred_element_type=jnp.float32)
        c = t - mean
        var = jnp.dot(c * c, mstat, preferred_element_type=jnp.float32)
        return c * lax.rsqrt(var + eps) * gamma + beta

    # ln_ref rows: [q_gamma*scale, q_beta*scale, k_gamma, k_beta], each tiled
    # to (1, E) so the broadcast over N happens once, outside any loop.
    qn = layer_norm_all_heads(q_all, ln_ref[0:1, :], ln_ref[1:2, :])
    kn = layer_norm_all_heads(k_all, ln_ref[2:3, :], ln_ref[3:4, :])

    # Head-major (H, N, D) stacks from static lane slices (stacked along the
    # untiled leading axis); bf16 operands for the attention matmuls.
    qh = jnp.stack([qn[:, h * D:(h + 1) * D] for h in range(H)], axis=0)
    kh = jnp.stack([kn[:, h * D:(h + 1) * D] for h in range(H)], axis=0)
    vh = jnp.stack([v_all[:, h * D:(h + 1) * D] for h in range(H)], axis=0)
    qh = qh.astype(jnp.bfloat16)
    kh = kh.astype(jnp.bfloat16)
    vh = vh.astype(jnp.bfloat16)

    # All heads' scores with ONE batched matmul (bf16 MXU, f32 accumulate).
    s = jnp.einsum('hnd,hmd->hnm', qh, kh,
                   preferred_element_type=jnp.float32)        # (H, N, N)
    s = s - jnp.max(s, axis=-1, keepdims=True)
    p = jnp.exp(s)
    # EUP approximate reciprocal: separate bundle slot, effectively free.
    p = p * pl.reciprocal(jnp.sum(p, axis=-1, keepdims=True), approx=True)

    # All heads' outputs with ONE batched matmul (bf16 MXU, f32 accumulate).
    o = jnp.einsum('hnm,hmd->hnd', p.astype(jnp.bfloat16), vh,
                   preferred_element_type=jnp.float32)        # (H, N, D) f32

    # Assemble one lane-dense (N, E) slab and store it ONCE (unmasked vst);
    # the wrapper reshapes to the module's (B, H, N, D) layout.
    o_ref[0] = jnp.concatenate([o[h] for h in range(H)],
                               axis=1).astype(o_ref.dtype)


# ----------------------------------------------------------------------------
# Wrapper
# ----------------------------------------------------------------------------
def attention_forward(x, params, num_heads, eps=1e-5):
    B, N, E = x.shape
    D = E // num_heads
    scale = D ** -0.5
    f32 = jnp.float32

    # bf16 operands for the MXU; accumulation stays f32 inside the kernel.
    x_bf = x.astype(jnp.bfloat16)
    w_bf = params["w_qkv"].astype(jnp.bfloat16)              # (3E, E), untransposed
    b = params["b_qkv"].reshape(1, 3 * E).astype(f32)

    # LayerNorm affines tiled across heads into lane-dense (E,) rows; the
    # 1/sqrt(D) attention scale is folded into the q affine.  Packed into a
    # single (4, E) input: one BlockSpec / one DMA instead of four.
    qg = jnp.tile(params["q_gamma"].astype(f32), num_heads) * scale
    qb = jnp.tile(params["q_beta"].astype(f32), num_heads) * scale
    kg = jnp.tile(params["k_gamma"].astype(f32), num_heads)
    kb = jnp.tile(params["k_beta"].astype(f32), num_heads)
    ln_packed = jnp.stack([qg, qb, kg, kb], axis=0)          # (4, E)

    # Block-diagonal per-head averaging matrix for LN stats on the MXU.
    head_id = jnp.arange(E) // D
    mstat = (head_id[:, None] == head_id[None, :]).astype(f32) / D   # (E, E)

    kern = functools.partial(fused_attention_kernel, num_heads=num_heads,
                             head_dim=D, eps=eps)
    out = pl.pallas_call(
        kern,
        out_shape=jax.ShapeDtypeStruct((B, N, E), f32),
        grid_spec=pltpu.PrefetchScalarGridSpec(
            num_scalar_prefetch=0,
            grid=(B,),
            in_specs=[
                pl.BlockSpec((1, N, E), lambda i: (i, 0, 0)),     # x (bf16)
                pl.BlockSpec((3 * E, E), lambda i: (0, 0)),       # W_qkv (resident)
                pl.BlockSpec((1, 3 * E), lambda i: (0, 0)),       # bias
                pl.BlockSpec((E, E), lambda i: (0, 0)),           # LN stat matrix
                pl.BlockSpec((4, E), lambda i: (0, 0)),           # packed LN affines
            ],
            out_specs=pl.BlockSpec((1, N, E), lambda i: (i, 0, 0)),
        ),
        compiler_params=pltpu.CompilerParams(
            dimension_semantics=("parallel",),
            vmem_limit_bytes=64 * 1024 * 1024),
    )(x_bf, w_bf, b, mstat, ln_packed)

    # Lane-dense (B, N, E) slab from the kernel; cheap wrapper-side
    # reshape/transpose to the module's (B, H, N, D) output layout.
    return out.reshape(B, N, num_heads, D).transpose(0, 2, 1, 3)


# ----------------------------------------------------------------------------
# Pure-JAX reference for validation (mirrors the PyTorch forward exactly).
# ----------------------------------------------------------------------------
def attention_reference(x, params, num_heads, eps=1e-5):
    B, N, E = x.shape
    D = E // num_heads
    scale = D ** -0.5
    qkv = x @ params["w_qkv"].T + params["b_qkv"]
    qkv = qkv.reshape(B, N, 3, num_heads, D).transpose(2, 0, 3, 1, 4)
    q, k, v = qkv[0], qkv[1], qkv[2]

    def ln(t, g, b):
        mu = t.mean(-1, keepdims=True)
        var = ((t - mu) ** 2).mean(-1, keepdims=True)
        return (t - mu) / jnp.sqrt(var + eps) * g + b

    q = ln(q, params["q_gamma"], params["q_beta"]) * scale
    k = ln(k, params["k_gamma"], params["k_beta"])
    s = jnp.einsum("bhnd,bhmd->bhnm", q, k)
    p = jax.nn.softmax(s, axis=-1)
    return jnp.einsum("bhnm,bhmd->bhnd", p, v)


if __name__ == "__main__":
    # Small shapes consistent with the module: B=2, N=8, embed_dim=32, heads=4.
    B, N, E, H = 2, 8, 32, 4
    D = E // H

    key = jax.random.PRNGKey(0)
    kx, kw, kb, kqg, kqb, kkg, kkb = jax.random.split(key, 7)

    x = jax.random.normal(kx, (B, N, E), dtype=jnp.float32)
    params = {
        # nn.Linear(embed_dim, 3*embed_dim): weight (3E, E), bias (3E,)
        "w_qkv": jax.random.normal(kw, (3 * E, E), dtype=jnp.float32)
                 * (1.0 / jnp.sqrt(E)),
        "b_qkv": jax.random.normal(kb, (3 * E,), dtype=jnp.float32) * 0.02,
        # nn.LayerNorm(head_dim): weight (D,), bias (D,) — perturbed so LN matters
        "q_gamma": 1.0 + 0.1 * jax.random.normal(kqg, (D,), dtype=jnp.float32),
        "q_beta": 0.1 * jax.random.normal(kqb, (D,), dtype=jnp.float32),
        "k_gamma": 1.0 + 0.1 * jax.random.normal(kkg, (D,), dtype=jnp.float32),
        "k_beta": 0.1 * jax.random.normal(kkb, (D,), dtype=jnp.float32),
    }

    out = attention_forward(x, params, num_heads=H)
    out = jax.block_until_ready(out)
    assert out.shape == (B, H, N, D), out.shape

    # Compare against an f32 reference whose inputs are pre-rounded to bf16
    # (the kernel deliberately feeds the MXU bf16 x / W_qkv); the remaining
    # tolerance covers in-kernel bf16 q/k/p/v casts and the EUP approx
    # reciprocal in the softmax denominator.
    ref_params = dict(params)
    ref_params["w_qkv"] = params["w_qkv"].astype(jnp.bfloat16).astype(jnp.float32)
    ref = attention_reference(
        x.astype(jnp.bfloat16).astype(jnp.float32), ref_params, num_heads=H)
    assert jnp.allclose(out, ref, atol=3e-2, rtol=3e-2), float(
        jnp.max(jnp.abs(out - ref)))

    print("KERNEL_OK")
</pallas_src>

<mosaic_0001>
module attributes {stable_mosaic.version = 11 : i64} {
  func.func @fused_attention_kernel(%arg0: i32, %arg1: memref<1x8x32xbf16, #tpu.memory_space<vmem>>, %arg2: memref<96x32xbf16, #tpu.memory_space<vmem>>, %arg3: memref<1x96xf32, #tpu.memory_space<vmem>>, %arg4: memref<32x32xf32, #tpu.memory_space<vmem>>, %arg5: memref<4x32xf32, #tpu.memory_space<vmem>>, %arg6: memref<1x8x32xf32, #tpu.memory_space<vmem>>) attributes {dimension_semantics = [#tpu.dimension_semantics<parallel>], iteration_bounds = array<i64: 2>, scalar_prefetch = 0 : i64, scratch_operands = 0 : i64, tpu.core_type = #tpu.core_type<tc>, window_params = [{transform_indices = @transform_0, window_bounds = array<i64: 1, 8, 32>}, {pipeline_mode = #tpu.pipeline_mode<synchronous>, transform_indices = @transform_1, window_bounds = array<i64: 96, 32>}, {pipeline_mode = #tpu.pipeline_mode<synchronous>, transform_indices = @transform_2, window_bounds = array<i64: 1, 96>}, {pipeline_mode = #tpu.pipeline_mode<synchronous>, transform_indices = @transform_3, window_bounds = array<i64: 32, 32>}, {pipeline_mode = #tpu.pipeline_mode<synchronous>, transform_indices = @transform_4, window_bounds = array<i64: 4, 32>}, {transform_indices = @transform_5, window_bounds = array<i64: 1, 8, 32>}]} {
    %c0 = arith.constant 0 : index
    %c0_0 = arith.constant 0 : index
    %c0_1 = arith.constant 0 : index
    %0 = vector.load %arg1[%c0, %c0_0, %c0_1] : memref<1x8x32xbf16, #tpu.memory_space<vmem>>, vector<1x8x32xbf16>
    %1 = vector.shape_cast %0 : vector<1x8x32xbf16> to vector<8x32xbf16>
    %c0_2 = arith.constant 0 : index
    %c0_3 = arith.constant 0 : index
    %2 = vector.load %arg2[%c0_2, %c0_3] : memref<96x32xbf16, #tpu.memory_space<vmem>>, vector<96x32xbf16>
    %cst = arith.constant dense<0.000000e+00> : vector<8x96xf32>
    %3 = tpu.matmul %1, %2, %cst {dimension_numbers = #tpu.dot_dimension_numbers<[1], [1], [0], [0], [0, 0, 1, 0], [], []>} : vector<8x32xbf16>, vector<96x32xbf16>, vector<8x96xf32> -> vector<8x96xf32>
    %c0_4 = arith.constant 0 : index
    %c0_5 = arith.constant 0 : index
    %4 = vector.load %arg3[%c0_4, %c0_5] : memref<1x96xf32, #tpu.memory_space<vmem>>, vector<1x96xf32>
    %5 = vector.broadcast %4 : vector<1x96xf32> to vector<8x96xf32>
    %6 = arith.addf %3, %5 : vector<8x96xf32>
    %7 = vector.extract_strided_slice %6 {offsets = [0, 0], sizes = [8, 32], strides = [1, 1]} : vector<8x96xf32> to vector<8x32xf32>
    %8 = vector.extract_strided_slice %6 {offsets = [0, 32], sizes = [8, 32], strides = [1, 1]} : vector<8x96xf32> to vector<8x32xf32>
    %9 = vector.extract_strided_slice %6 {offsets = [0, 64], sizes = [8, 32], strides = [1, 1]} : vector<8x96xf32> to vector<8x32xf32>
    %c0_6 = arith.constant 0 : index
    %c0_7 = arith.constant 0 : index
    %10 = vector.load %arg4[%c0_6, %c0_7] : memref<32x32xf32, #tpu.memory_space<vmem>>, vector<32x32xf32>
    %c0_8 = arith.constant 0 : index
    %c0_9 = arith.constant 0 : index
    %11 = vector.load %arg5[%c0_8, %c0_9] : memref<4x32xf32, #tpu.memory_space<vmem>>, vector<1x32xf32>
    %c1 = arith.constant 1 : index
    %c0_10 = arith.constant 0 : index
    %12 = vector.load %arg5[%c1, %c0_10] : memref<4x32xf32, #tpu.memory_space<vmem>>, vector<1x32xf32>
    %cst_11 = arith.constant dense<0.000000e+00> : vector<8x32xf32>
    %13 = tpu.matmul %7, %10, %cst_11 {dimension_numbers = #tpu.dot_dimension_numbers<[1], [0], [0], [1], [0, 0, 1, 1], [], []>} : vector<8x32xf32>, vector<32x32xf32>, vector<8x32xf32> -> vector<8x32xf32>
    %14 = arith.subf %7, %13 : vector<8x32xf32>
    %15 = arith.mulf %14, %14 : vector<8x32xf32>
    %cst_12 = arith.constant dense<0.000000e+00> : vector<8x32xf32>
    %16 = tpu.matmul %15, %10, %cst_12 {dimension_numbers = #tpu.dot_dimension_numbers<[1], [0], [0], [1], [0, 0, 1, 1], [], []>} : vector<8x32xf32>, vector<32x32xf32>, vector<8x32xf32> -> vector<8x32xf32>
    %cst_13 = arith.constant 9.99999974E-6 : f32
    %17 = vector.broadcast %cst_13 : f32 to vector<8x32xf32>
    %18 = arith.addf %16, %17 : vector<8x32xf32>
    %19 = math.rsqrt %18 : vector<8x32xf32>
    %20 = arith.mulf %14, %19 : vector<8x32xf32>
    %21 = vector.broadcast %11 : vector<1x32xf32> to vector<8x32xf32>
    %22 = arith.mulf %20, %21 : vector<8x32xf32>
    %23 = vector.broadcast %12 : vector<1x32xf32> to vector<8x32xf32>
    %24 = arith.addf %22, %23 : vector<8x32xf32>
    %c2 = arith.constant 2 : index
    %c0_14 = arith.constant 0 : index
    %25 = vector.load %arg5[%c2, %c0_14] : memref<4x32xf32, #tpu.memory_space<vmem>>, vector<1x32xf32>
    %c3 = arith.constant 3 : index
    %c0_15 = arith.constant 0 : index
    %26 = vector.load %arg5[%c3, %c0_15] : memref<4x32xf32, #tpu.memory_space<vmem>>, vector<1x32xf32>
    %cst_16 = arith.constant dense<0.000000e+00> : vector<8x32xf32>
    %27 = tpu.matmul %8, %10, %cst_16 {dimension_numbers = #tpu.dot_dimension_numbers<[1], [0], [0], [1], [0, 0, 1, 1], [], []>} : vector<8x32xf32>, vector<32x32xf32>, vector<8x32xf32> -> vector<8x32xf32>
    %28 = arith.subf %8, %27 : vector<8x32xf32>
    %29 = arith.mulf %28, %28 : vector<8x32xf32>
    %cst_17 = arith.constant dense<0.000000e+00> : vector<8x32xf32>
    %30 = tpu.matmul %29, %10, %cst_17 {dimension_numbers = #tpu.dot_dimension_numbers<[1], [0], [0], [1], [0, 0, 1, 1], [], []>} : vector<8x32xf32>, vector<32x32xf32>, vector<8x32xf32> -> vector<8x32xf32>
    %cst_18 = arith.constant 9.99999974E-6 : f32
    %31 = vector.broadcast %cst_18 : f32 to vector<8x32xf32>
    %32 = arith.addf %30, %31 : vector<8x32xf32>
    %33 = math.rsqrt %32 : vector<8x32xf32>
    %34 = arith.mulf %28, %33 : vector<8x32xf32>
    %35 = vector.broadcast %25 : vector<1x32xf32> to vector<8x32xf32>
    %36 = arith.mulf %34, %35 : vector<8x32xf32>
    %37 = vector.broadcast %26 : vector<1x32xf32> to vector<8x32xf32>
    %38 = arith.addf %36, %37 : vector<8x32xf32>
    %39 = vector.extract_strided_slice %24 {offsets = [0, 0], sizes = [8, 8], strides = [1, 1]} : vector<8x32xf32> to vector<8x8xf32>
    %40 = vector.extract_strided_slice %24 {offsets = [0, 8], sizes = [8, 8], strides = [1, 1]} : vector<8x32xf32> to vector<8x8xf32>
    %41 = vector.extract_strided_slice %24 {offsets = [0, 16], sizes = [8, 8], strides = [1, 1]} : vector<8x32xf32> to vector<8x8xf32>
    %42 = vector.extract_strided_slice %24 {offsets = [0, 24], sizes = [8, 8], strides = [1, 1]} : vector<8x32xf32> to vector<8x8xf32>
    %43 = vector.shape_cast %39 : vector<8x8xf32> to vector<1x8x8xf32>
    %44 = vector.shape_cast %40 : vector<8x8xf32> to vector<1x8x8xf32>
    %45 = vector.shape_cast %41 : vector<8x8xf32> to vector<1x8x8xf32>
    %46 = vector.shape_cast %42 : vector<8x8xf32> to vector<1x8x8xf32>
    %47 = tpu.concatenate %43, %44, %45, %46 in 0 : vector<1x8x8xf32>, vector<1x8x8xf32>, vector<1x8x8xf32>, vector<1x8x8xf32> -> vector<4x8x8xf32>
    %48 = vector.extract_strided_slice %38 {offsets = [0, 0], sizes = [8, 8], strides = [1, 1]} : vector<8x32xf32> to vector<8x8xf32>
    %49 = vector.extract_strided_slice %38 {offsets = [0, 8], sizes = [8, 8], strides = [1, 1]} : vector<8x32xf32> to vector<8x8xf32>
    %50 = vector.extract_strided_slice %38 {offsets = [0, 16], sizes = [8, 8], strides = [1, 1]} : vector<8x32xf32> to vector<8x8xf32>
    %51 = vector.extract_strided_slice %38 {offsets = [0, 24], sizes = [8, 8], strides = [1, 1]} : vector<8x32xf32> to vector<8x8xf32>
    %52 = vector.shape_cast %48 : vector<8x8xf32> to vector<1x8x8xf32>
    %53 = vector.shape_cast %49 : vector<8x8xf32> to vector<1x8x8xf32>
    %54 = vector.shape_cast %50 : vector<8x8xf32> to vector<1x8x8xf32>
    %55 = vector.shape_cast %51 : vector<8x8xf32> to vector<1x8x8xf32>
    %56 = tpu.concatenate %52, %53, %54, %55 in 0 : vector<1x8x8xf32>, vector<1x8x8xf32>, vector<1x8x8xf32>, vector<1x8x8xf32> -> vector<4x8x8xf32>
    %57 = vector.extract_strided_slice %9 {offsets = [0, 0], sizes = [8, 8], strides = [1, 1]} : vector<8x32xf32> to vector<8x8xf32>
    %58 = vector.extract_strided_slice %9 {offsets = [0, 8], sizes = [8, 8], strides = [1, 1]} : vector<8x32xf32> to vector<8x8xf32>
    %59 = vector.extract_strided_slice %9 {offsets = [0, 16], sizes = [8, 8], strides = [1, 1]} : vector<8x32xf32> to vector<8x8xf32>
    %60 = vector.extract_strided_slice %9 {offsets = [0, 24], sizes = [8, 8], strides = [1, 1]} : vector<8x32xf32> to vector<8x8xf32>
    %61 = vector.shape_cast %57 : vector<8x8xf32> to vector<1x8x8xf32>
    %62 = vector.shape_cast %58 : vector<8x8xf32> to vector<1x8x8xf32>
    %63 = vector.shape_cast %59 : vector<8x8xf32> to vector<1x8x8xf32>
    %64 = vector.shape_cast %60 : vector<8x8xf32> to vector<1x8x8xf32>
    %65 = tpu.concatenate %61, %62, %63, %64 in 0 : vector<1x8x8xf32>, vector<1x8x8xf32>, vector<1x8x8xf32>, vector<1x8x8xf32> -> vector<4x8x8xf32>
    %66 = arith.truncf %47 : vector<4x8x8xf32> to vector<4x8x8xbf16>
    %67 = arith.truncf %56 : vector<4x8x8xf32> to vector<4x8x8xbf16>
    %68 = arith.truncf %65 : vector<4x8x8xf32> to vector<4x8x8xbf16>
    "tpu.trace_start"() <{level = 10 : i32, message = "hnd,hmd->hnm"}> : () -> ()
    %cst_19 = arith.constant dense<0.000000e+00> : vector<4x8x8xf32>
    %69 = tpu.matmul %66, %67, %cst_19 {dimension_numbers = #tpu.dot_dimension_numbers<[2], [2], [1], [1], [0, 0, 0, 1, 1, 1], [0], [0]>} : vector<4x8x8xbf16>, vector<4x8x8xbf16>, vector<4x8x8xf32> -> vector<4x8x8xf32>
    "tpu.trace_stop"() : () -> ()
    %cst_20 = arith.constant dense<0xFF800000> : vector<4x8xf32>
    %70 = vector.multi_reduction <maximumf>, %69, %cst_20 [2] : vector<4x8x8xf32> to vector<4x8xf32>
    %71 = vector.shape_cast %70 : vector<4x8xf32> to vector<4x8x1xf32>
    %72 = vector.broadcast %71 : vector<4x8x1xf32> to vector<4x8x8xf32>
    %73 = arith.subf %69, %72 : vector<4x8x8xf32>
    %74 = math.exp %73 : vector<4x8x8xf32>
    %cst_21 = arith.constant dense<0.000000e+00> : vector<4x8xf32>
    %75 = vector.multi_reduction <add>, %74, %cst_21 [2] : vector<4x8x8xf32> to vector<4x8xf32>
    %76 = vector.shape_cast %75 : vector<4x8xf32> to vector<4x8x1xf32>
    %77 = tpu.reciprocal %76 {approx = true} : vector<4x8x1xf32> -> vector<4x8x1xf32>
    %78 = vector.broadcast %77 : vector<4x8x1xf32> to vector<4x8x8xf32>
    %79 = arith.mulf %74, %78 : vector<4x8x8xf32>
    %80 = arith.truncf %79 : vector<4x8x8xf32> to vector<4x8x8xbf16>
    "tpu.trace_start"() <{level = 10 : i32, message = "hnm,hmd->hnd"}> : () -> ()
    %cst_22 = arith.constant dense<0.000000e+00> : vector<4x8x8xf32>
    %81 = tpu.matmul %80, %68, %cst_22 {dimension_numbers = #tpu.dot_dimension_numbers<[2], [1], [1], [2], [0, 0, 0, 1, 1, 2], [0], [0]>} : vector<4x8x8xbf16>, vector<4x8x8xbf16>, vector<4x8x8xf32> -> vector<4x8x8xf32>
    "tpu.trace_stop"() : () -> ()
    %82 = vector.extract_strided_slice %81 {offsets = [0, 0, 0], sizes = [1, 8, 8], strides = [1, 1, 1]} : vector<4x8x8xf32> to vector<1x8x8xf32>
    %83 = vector.shape_cast %82 : vector<1x8x8xf32> to vector<8x8xf32>
    %84 = vector.extract_strided_slice %81 {offsets = [1, 0, 0], sizes = [1, 8, 8], strides = [1, 1, 1]} : vector<4x8x8xf32> to vector<1x8x8xf32>
    %85 = vector.shape_cast %84 : vector<1x8x8xf32> to vector<8x8xf32>
    %86 = vector.extract_strided_slice %81 {offsets = [2, 0, 0], sizes = [1, 8, 8], strides = [1, 1, 1]} : vector<4x8x8xf32> to vector<1x8x8xf32>
    %87 = vector.shape_cast %86 : vector<1x8x8xf32> to vector<8x8xf32>
    %88 = vector.extract_strided_slice %81 {offsets = [3, 0, 0], sizes = [1, 8, 8], strides = [1, 1, 1]} : vector<4x8x8xf32> to vector<1x8x8xf32>
    %89 = vector.shape_cast %88 : vector<1x8x8xf32> to vector<8x8xf32>
    %90 = tpu.concatenate %83, %85, %87, %89 in 1 : vector<8x8xf32>, vector<8x8xf32>, vector<8x8xf32>, vector<8x8xf32> -> vector<8x32xf32>
    %c0_23 = arith.constant 0 : index
    %c0_24 = arith.constant 0 : index
    %c0_25 = arith.constant 0 : index
    %91 = vector.load %arg6[%c0_23, %c0_24, %c0_25] : memref<1x8x32xf32, #tpu.memory_space<vmem>>, vector<1x8x32xf32>
    %92 = vector.shape_cast %91 : vector<1x8x32xf32> to vector<8x32xf32>
    %93 = vector.shape_cast %90 : vector<8x32xf32> to vector<1x8x32xf32>
    tpu.vector_store %arg6[%c0_23, %c0_24, %c0_25], %93 {strides = array<i32>} : memref<1x8x32xf32, #tpu.memory_space<vmem>>, vector<1x8x32xf32>,
    return
  }
  func.func @transform_0(%arg0: i32) -> (i32, i32, i32) {
    %c0_i32 = arith.constant 0 : i32
    %c0_i32_0 = arith.constant 0 : i32
    %c0_i32_1 = arith.constant 0 : i32
    return %arg0, %c0_i32, %c0_i32_0 : i32, i32, i32
  }
  func.func @transform_1(%arg0: i32) -> (i32, i32) {
    %c0_i32 = arith.constant 0 : i32
    %c0_i32_0 = arith.constant 0 : i32
    %c0_i32_1 = arith.constant 0 : i32
    return %c0_i32, %c0_i32_0 : i32, i32
  }
  func.func @transform_2(%arg0: i32) -> (i32, i32) {
    %c0_i32 = arith.constant 0 : i32
    %c0_i32_0 = arith.constant 0 : i32
    %c0_i32_1 = arith.constant 0 : i32
    return %c0_i32, %c0_i32_0 : i32, i32
  }
  func.func @transform_3(%arg0: i32) -> (i32, i32) {
    %c0_i32 = arith.constant 0 : i32
    %c0_i32_0 = arith.constant 0 : i32
    %c0_i32_1 = arith.constant 0 : i32
    return %c0_i32, %c0_i32_0 : i32, i32
  }
  func.func @transform_4(%arg0: i32) -> (i32, i32) {
    %c0_i32 = arith.constant 0 : i32
    %c0_i32_0 = arith.constant 0 : i32
    %c0_i32_1 = arith.constant 0 : i32
    return %c0_i32, %c0_i32_0 : i32, i32
  }
  func.func @transform_5(%arg0: i32) -> (i32, i32, i32) {
    %c0_i32 = arith.constant 0 : i32
    %c0_i32_0 = arith.constant 0 : i32
    %c0_i32_1 = arith.constant 0 : i32
    return %arg0, %c0_i32, %c0_i32_0 : i32, i32, i32
  }
}

</mosaic_0001>

<bundles_post_ra>
// kernel: tpu_custom_call.1
= control target key start
LH: loop header
LB: loop body
LE: loop exit
PB: predicated region body
PF: predicated region fallthrough
CT: control target
= control target key end

     0   :  { %10 = vsyncpa [#allocation3], 0  ;;  %s1258_s0 = inlined_call_operand.vmem [shape: bf16[2,8,32], index: 0, kind: input, shape index: {}]   ;;  %s1259_s1 = inlined_call_operand.vmem [shape: bf16[96,32], index: 1, kind: input, shape index: {}]   ;;  %s1260_s2 = inlined_call_operand.vmem [shape: f32[1,96], index: 2, kind: input, shape index: {}]   ;;  %s1261_s3 = inlined_call_operand.vmem [shape: f32[32,32], index: 3, kind: input, shape index: {}]   ;;  %s1262_s4 = inlined_call_operand.vmem [shape: f32[4,32], index: 4, kind: input, shape index: {}]   ;;  %s1263_s5 = inlined_call_operand.hbm [shape: f32[2,8,32], index: 5, kind: output, shape index: {}]  }
   0x1   :  { %12 = vsyncpa [#allocation3 + $0x1], 0  ;;  %s1061_s18 = smov 0   ;;  %s1063_s19 = smov 0  }
   0x2   :  { %s1065_s20 = smov 0   ;;  %s1067_s21 = smov 0  }
   0x3 LB: > { %s1082_s22 = sadd.s32 4294967295, %s1020_s21   ;;  %s832_s23 = sadd.s32 4294967294, %s1020_s21   ;;  %s1020_s21 = sphi %s1067_s21, %s1269_s21   ;;  %s1016_s20 = sphi %s1065_s20, %s1268_s20   ;;  %s1012_s19 = sphi %s1063_s19, %s1267_s19   ;;  %s1008_s18 = sphi %s1061_s18, %s1266_s18  }
   0x4   : > { %s1086_s24 = sadd.s32 1, %s1020_s21   ;;  %s135_s25 = sadd.s32 1, %s1016_s20 }
   0x5   : > { %s132_s26 = ssub.s32 %s1020_s21, %s1086_s24  ;;  %p145_p0 = scmp.ne.s32.totalorder %s1016_s20, %s1012_s19 }
   0x6   : > { %p133_p1 = scmp.eq.s32.totalorder %s132_s26, 0  ;;  %p146_p2 = scmp.eq.s32.totalorder %s1082_s22, 1 }
   0x7   : > { %p151_p3 = scmp.ne.s32.totalorder %s1012_s19, %s1008_s18  ;;  %p152_p4 = scmp.eq.s32.totalorder %s832_s23, 1 }
   0x8   : > { %s1097_s27 = scalar_select %p133_p1, %s1016_s20, %s135_s25  }
   0x9   : > { %p1099_p5 = por %p146_p2, %p145_p0  ;;  %p1103_p6 = por %p152_p4, %p151_p3 }
   0xa   : > { %p835_p7 = scmp.ge.s32.totalorder %s1020_s21, 1  ;;  %p189_p8 = scmp.lt.s32.totalorder %s1020_s21, 3 }
   0xc   : > { %p190_p9 = pnand %p835_p7, %p189_p8 }
   0xd   : > { %p216_p10 = scmp.lt.s32.totalorder (!%p190_p9), %s1082_s22, 1  ;;  %s1022_s16 = smov (!%p190_p9), 96  }
   0xe   : > { %193 = sbr.rel (%p190_p9) target bundleno = 1830 (0x726), region = 40  ;;  %s1023_s17 = smov (!%p190_p9), 32  }
   0xf   : > { %s1025_s7 = smov (!%p190_p9), 120   ;;  %s1026_s8 = smov (!%p190_p9), 104  }
  0x10   : > { %s1027_s13 = smov (!%p190_p9), 64   ;;  %s1028_s14 = smov (!%p190_p9), 16  }
  0x11   : > { %s1029_s15 = smov (!%p190_p9), 24   ;;  %s876_s25 = sshll.u32 (!%p190_p9), %s1082_s22, 3 }
  0x13   : > { %v884_v0 = vld [vmem:[%s1259_s1 + $0x28] sm:$0xff]  ;;  %vm268_vm0 = vcmask 261120   ;;  %v883_v2 = vld [vmem:[%s1259_s1 + $0x20] sm:$0xff]  ;;  %v882_v4 = vld [vmem:[%s1259_s1 + $0x18] sm:$0xff]  ;;  %s217_s30 = scalar_select %p216_p10, %s1082_s22, 1  ;;  %vm502_vm7 = vcmask 64512  }
  0x14   : > { %v288_v1 = vsel %vm268_vm0, %v884_v0, 0  ;;  %v285_v3 = vsel %vm268_vm0, %v883_v2, 0  ;;  %v282_v5 = vsel %vm268_vm0, %v882_v4, 0  ;;  %v306_v6 = vld [vmem:[%s1261_s3 + $0x18] sm:$0xff]  ;;  %v305_v7 = vld [vmem:[%s1261_s3 + $0x10] sm:$0xff]  ;;  %v880_v10 = vld [vmem:[%s1259_s1 + $0x8] sm:$0xff] }
  0x15   : > { %292 = vmatpush.bf16.xpose.msra.mxu0 %v288_v1  ;;  %324 = vmatpush.msra.mxu1 %v306_v6  ;;  %v881_v8 = vld [vmem:[%s1259_s1 + $0x10] sm:$0xff]  ;;  %v276_v11 = vsel %vm268_vm0, %v880_v10, 0  ;;  %v879_v12 = vld [vmem:[%s1259_s1] sm:$0xff]  ;;  %s837_s6 = sshll.u32 %s217_s30, 2  ;;  %v304_v15 = vld [vmem:[%s1261_s3 + $0x8] sm:$0xff]  ;;  %vm650_vm8 = vcmask 1043456  }
  0x16   : > { %390 = vmatpush.msra.mxu3 %v306_v6  ;;  %349 = vmatpush.msra.mxu2 %v306_v6  ;;  %v279_v9 = vsel %vm268_vm0, %v881_v8, 0  ;;  %v273_v13 = vsel %vm268_vm0, %v879_v12, 0  ;;  %s219_s9 = scalar_lea.vmem %s1258_s0, %s837_s6  ;;  %v303_v16 = vld [vmem:[%s1261_s3] sm:$0xff]  ;;  %s1024_s6 = smov 112   ;;  %vm752_vm9 = vcmask 130048   ;;  %vm754_vm10 = vcmask 195584  }
  0x17   : > { %325 = vmatpush.msra.mxu1 %v305_v7  ;;  %v221_v14 = vld [vmem:[%s219_s9] sm:$0xf] }
  0x18   : > { %391 = vmatpush.msra.mxu3 %v305_v7  ;;  %350 = vmatpush.msra.mxu2 %v305_v7  ;;  %v933_v17 = vld [vmem:[%s1260_s2] ss:$0 sm:$0xff]  ;;  %v934_v30 = vld [vmem:[%s1262_s4 + $0x2] ss:$0 sm:$0xff]  ;;  %v935_v31 = vld [vmem:[%s1262_s4 + $0x3] ss:$0 sm:$0xff] }
  0x19   : > { %326 = vmatpush.msra.mxu1 %v304_v15  ;;  %446 = vrot.lane.b32.xlu2 %v934_v30, %s1023_s17  ;;  %v936_v0 = vld [vmem:[%s1262_s4] ss:$0 sm:$0xff]  ;;  %v937_v2 = vld [vmem:[%s1262_s4 + $0x1] ss:$0 sm:$0xff] }
  0x1a   : > { %392 = vmatpush.msra.mxu3 %v304_v15  ;;  %351 = vmatpush.msra.mxu2 %v304_v15 }
  0x1b   : > { %327 = vmatpush.msra.mxu1 %v303_v16 }
  0x1c   : > { %393 = vmatpush.msra.mxu3 %v303_v16  ;;  %352 = vmatpush.msra.mxu2 %v303_v16 }
  0x1d   : > { %293 = vmatpush.bf16.xpose.msra.mxu0 %v285_v3  ;;  %421 = vmatpush.msrb.mxu1 %v306_v6 }
  0x1f   : > { %422 = vmatpush.msrb.mxu1 %v305_v7 }
  0x21   : > { %423 = vmatpush.msrb.mxu1 %v304_v15  ;;  %452 = vrot.lane.b32.xlu2 %v935_v31, %s1023_s17 }
  0x23   : > { %424 = vmatpush.msrb.mxu1 %v303_v16 }
  0x25   : > { %294 = vmatpush.bf16.xpose.msra.mxu0 %v282_v5 }
  0x2d   : > { %295 = vmatpush.bf16.xpose.msra.mxu0 %v279_v9 }
  0x35   : > { %296 = vmatpush.bf16.xpose.msra.mxu0 %v276_v11 }
  0x3d   : > { %297 = vmatpush.bf16.xpose.msra.mxu0 %v273_v13 }
  0x44   : > { %862 = vmatmul.msk.bf16.vlgmr.msra.gmra.mxu0 %vm268_vm0, %v221_v14 }
  0x73   : > { %v447_v41 = vpop.permute.xlu2 %446 }
  0x7b   : > { %v453_v44 = vpop.permute.xlu2 %452 }
  0xc1   : > { %v299_v18 = vpop.f32.mrf.mxu0 }
  0xc2   : > { %v1154_v19 = vadd.f32 %v933_v17, %v299_v18 }
  0xc4   : > { %374 = vrot.lane.b32.xlu0 %v1154_v19, %s1022_s16  ;;  %863 = vmatmul.msk.f32.vlgmr.msra.gmra.mxu1 %vm268_vm0, %v1154_v19 }
  0xc9   : > { %v301_v20 = vpop.f32.mrf.mxu0 }
 0x136   : > { %v375_v21 = vpop.permute.xlu0 %374 }
 0x137   : > { %865 = vmatmul.msk.f32.vlgmr.msra.gmra.mxu3 %vm268_vm0, %v375_v21 }
 0x141   : > { %v329_v22 = vpop.f32.mrf.mxu1 }
 0x142   : > { %v332_v23 = vsub.f32 %v1154_v19, %v329_v22 }
 0x144   : > { %v333_v24 = vmul.f32 %v332_v23, %v332_v23 }
 0x146   : > { %864 = vmatmul.msk.f32.vlgmr.msra.gmra.mxu2 %vm268_vm0, %v333_v24 }
 0x1ba   : > { %v395_v25 = vpop.f32.mrf.mxu3 }
 0x1bb   : > { %399 = vrot.lane.b32.xlu0 %v395_v25, %s1023_s17 }
 0x1c9   : > { %v354_v50 = vpop.f32.mrf.mxu2 }
 0x1ca   : > { %v355_v51 = vadd.f32 1e-05, %v354_v50 }
 0x1cc   : > { %vm363_vm5 = vweird.f32 %v355_v51 }
 0x22d   : > { %v400_v26 = vpop.permute.xlu0 %399 }
 0x22e   : > { %v402_v27 = vsub.f32 %v1154_v19, %v400_v26 }
 0x230   : > { %v403_v28 = vmul.f32 %v402_v27, %v402_v27 }
 0x232   : > { %405 = vrot.lane.b32.xlu1 %v403_v28, %s1022_s16 }
 0x2a4   : > { %v406_v29 = vpop.permute.xlu1 %405 }
 0x2a5   : > { %866 = vmatmul.msk.f32.vlgmr.msrb.gmra.mxu1 %vm268_vm0, %v406_v29 }
 0x322   : > { %v426_v32 = vpop.f32.mrf.mxu1 }
 0x323   : > { %v427_v33 = vadd.f32 1e-05, %v426_v32 }
 0x325   : > { %938 = vrsqrt.f32 %v427_v33  ;;  %vm435_vm2 = vweird.f32 %v427_v33 }
 0x326   : > { %940 = vrsqrt.f32 %v355_v51 }
 0x32b   : > { %v939_v34 = vpop.eup %938 }
 0x32c   : > { %v430_v35 = vmul.f32 %v939_v34, %v427_v33  ;;  %vm436_vm1 = vweird.f32 %v939_v34  ;;  %v941_v52 = vpop.eup %940 }
 0x32d   : > { %vm437_vm3 = vmor %vm435_vm2, %vm436_vm1  ;;  %v358_v53 = vmul.f32 %v941_v52, %v355_v51  ;;  %vm364_vm4 = vweird.f32 %v941_v52 }
 0x32e   : > { %v431_v36 = vmul.f32 %v939_v34, %v430_v35  ;;  %vm365_vm6 = vmor %vm363_vm5, %vm364_vm4 }
 0x32f   : > { %v359_v54 = vmul.f32 %v941_v52, %v358_v53 }
 0x330   : > { %v432_v37 = vmul.f32 0.5, %v431_v36 }
 0x331   : > { %v360_v55 = vmul.f32 0.5, %v359_v54 }
 0x332   : > { %v433_v38 = vsub.f32 1.5, %v432_v37 }
 0x333   : > { %v361_v56 = vsub.f32 1.5, %v360_v55 }
 0x334   : > { %v434_v39 = vmul.f32 %v939_v34, %v433_v38 }
 0x335   : > { %v362_v57 = vmul.f32 %v941_v52, %v361_v56 }
 0x336   : > { %v438_v40 = vsel %vm437_vm3, %v939_v34, %v434_v39 }
 0x337   : > { %440 = vrot.lane.b32.xlu1 %v438_v40, %s1023_s17  ;;  %v366_v60 = vsel %vm365_vm6, %v941_v52, %v362_v57  ;;  %s213_s17 = sand.u32 1, %s1012_s19  }
 0x338   : > { %v367_v62 = vmul.f32 %v366_v60, %v332_v23  ;;  %s836_s23 = sshll.u32 %s213_s17, 3  ;;  %s758_s22 = scalar_lea.sflag [#allocation3], %s213_s17 }
 0x33a   : > { %v369_v1 = vmul.f32 %v936_v0, %v367_v62 }
 0x33c   : > { %v371_v3 = vadd.f32 %v937_v2, %v369_v1 }
 0x33e   : > { %v485_v14 = vpack.c.bf16 %v371_v3, %v371_v3 }
 0x3a9   : > { %v441_v42 = vpop.permute.xlu1 %440 }
 0x3aa   : > { %v443_v43 = vmul.f32 %v441_v42, %v402_v27 }
 0x3ac   : > { %v449_v45 = vmul.f32 %v447_v41, %v443_v43 }
 0x3ae   : > { %v455_v46 = vadd.f32 %v453_v44, %v449_v45  ;;  %v493_v45 = vpack.c.bf16 %v1154_v19, %v1154_v19 }
 0x3b0   : > { %470 = vrot.lane.b32.xlu2 %v455_v46, %s1024_s6  ;;  %467 = vrot.lane.b32.xlu1 %v455_v46, %s1025_s7  ;;  %v489_v47 = vpack.c.bf16 %v455_v46, %v455_v46 }
 0x3b1   : > { %473 = vrot.lane.b32.xlu0 %v455_v46, %s1026_s8  ;;  %v643_v46 = vunpack.c.l.b16 %v493_v45 }
 0x3b2   : > { %v498_v48 = vunpack.c.l.b16 %v489_v47 }
 0x3b3   : > { %v644_v47 = vpack.c.b16 %v643_v46, %v643_v46 }
 0x3b4   : > { %v499_v49 = vpack.c.b16 %v498_v48, %v498_v48 }
 0x3b9   : > { %500 = vrot.lane.b32.xlu0 %v499_v49, %s1022_s16 }
 0x40a   : > { %v471_v58 = vpop.permute.xlu2 %470 }
 0x40b   : > { %v491_v59 = vpack.c.bf16 %v471_v58, %v471_v58 }
 0x40d   : > { %v547_v61 = vunpack.c.l.b16 %v491_v59 }
 0x40f   : > { %v548_v63 = vpack.c.b16 %v547_v61, %v547_v61 }
 0x411   : > { %549 = vrot.lane.b32.xlu0 %v548_v63, %s1022_s16 }
 0x419   : > { %460 = vrot.lane.b32.xlu0 %v371_v3, %s1024_s6 }
 0x422   : > { %v468_v4 = vpop.permute.xlu1 %467 }
 0x423   : > { %v490_v5 = vpack.c.bf16 %v468_v4, %v468_v4  ;;  %v474_v6 = vpop.permute.xlu0 %473 }
 0x424   : > { %v492_v7 = vpack.c.bf16 %v474_v6, %v474_v6 }
 0x425   : > { %v523_v8 = vunpack.c.l.b16 %v490_v5 }
 0x426   : > { %v571_v9 = vunpack.c.l.b16 %v492_v7 }
 0x427   : > { %v524_v10 = vpack.c.b16 %v523_v8, %v523_v8 }
 0x428   : > { %v572_v11 = vpack.c.b16 %v571_v9, %v571_v9 }
 0x429   : > { %525 = vrot.lane.b32.xlu2 %v524_v10, %s1022_s16 }
 0x42a   : > { %573 = vrot.lane.b32.xlu1 %v572_v11, %s1022_s16  ;;  %s1030_s16 = smov 8  }
 0x42b   : > { %v501_v12 = vpop.permute.xlu0 %500 }
 0x42c   : > { %v507_v13 = vsel %vm502_vm7, %v501_v12, 0 }
 0x42d   : > { %516 = vmatpush.bf16.xpose.msrb.mxu2 %v507_v13 }
 0x431   : > { %457 = vrot.lane.b32.xlu2 %v371_v3, %s1025_s7 }
 0x432   : > { %463 = vrot.lane.b32.xlu1 %v371_v3, %s1026_s8 }
 0x434   : > { %867 = vmatmul.msk.bf16.vlgmr.msrb.gmra.mxu2 %vm502_vm7, %v485_v14 }
 0x483   : > { %v526_v15 = vpop.permute.xlu2 %525  ;;  %v550_v16 = vpop.permute.xlu0 %549 }
 0x484   : > { %v555_v17 = vsel %vm502_vm7, %v550_v16, 0  ;;  %v531_v18 = vsel %vm502_vm7, %v526_v15, 0 }
 0x485   : > { %540 = vmatpush.bf16.xpose.msrb.mxu3 %v531_v18  ;;  %564 = vmatpush.bf16.xpose.msra.mxu1 %v555_v17 }
 0x48b   : > { %v461_v20 = vpop.permute.xlu0 %460  ;;  %v458_v21 = vpop.permute.xlu2 %457 }
 0x48c   : > { %v487_v22 = vpack.c.bf16 %v461_v20, %v461_v20  ;;  %v486_v23 = vpack.c.bf16 %v458_v21, %v458_v21 }
 0x48e   : > { %868 = vmatmul.msk.bf16.vlgmr.msrb.gmra.mxu3 %vm502_vm7, %v486_v23  ;;  %869 = vmatmul.msk.bf16.vlgmr.msra.gmra.mxu1 %vm502_vm7, %v487_v22 }
 0x49c   : > { %v574_v24 = vpop.permute.xlu1 %573 }
 0x49d   : > { %v579_v25 = vsel %vm502_vm7, %v574_v24, 0 }
 0x49e   : > { %588 = vmatpush.bf16.xpose.msra.mxu2 %v579_v25 }
 0x4a4   : > { %v464_v26 = vpop.permute.xlu1 %463 }
 0x4a5   : > { %v488_v27 = vpack.c.bf16 %v464_v26, %v464_v26 }
 0x4a7   : > { %870 = vmatmul.msk.bf16.vlgmr.msra.gmra.mxu2 %vm502_vm7, %v488_v27 }
 0x4b7   : > { %v518_v28 = vpop.f32.mrf.mxu2 }
 0x4b8   : > { %v594_v29 = vsel %vm502_vm7, %v518_v28, -inf }
 0x4b9   : > { %595 = vmax.xlane.f32.xlu1 %v594_v29 }
 0x4bf   : > { %v520_v30 = vpop.f32.mrf.mxu2 }
 0x4d2   : > { %479 = vrot.lane.b32.xlu1 %v1154_v19, %s1024_s6  ;;  %s768_s6 = scalar_lea.hbm %s1263_s5, %s876_s25 }
 0x4d3   : > { %s772_s9 = sshll.u32 %s768_s6, 4  ;;  %s773_s9 = int_to_ptr.hbm [resolvable:$true] %s772_s9 }
 0x4d4   : > { %s972_s10 = sshra.s32 %s773_s9, 4  ;;  %s973_s10 = int_to_ptr.hbm [resolvable:$true] %s972_s10 }
 0x4d5   : > { %s974_s11 = scalar_lea.hbm %s973_s10, 8  ;;  %p979_p0 = scmp.lt.s32.totalorder %s973_s10, %s1263_s5 }
 0x4d6   : > { %p975_p11 = scmp.ne.s32.totalorder %s973_s10, %s974_s11 }
 0x4d8   : > { %p976_p12 = pnand %p975_p11, %p1099_p5 }
 0x4da   : > { %p977_p13 = pneg %p976_p12 }
 0x50b   : > { %v566_v31 = vpop.f32.mrf.mxu1 }
 0x50c   : > { %v600_v32 = vsel %vm502_vm7, %v566_v31, -inf }
 0x50d   : > { %601 = vmax.xlane.f32.xlu2 %v600_v32 }
 0x511   : > { %v542_v33 = vpop.f32.mrf.mxu3 }
 0x512   : > { %v597_v35 = vsel %vm502_vm7, %v542_v33, -inf }
 0x513   : > { %v568_v34 = vpop.f32.mrf.mxu1 }
 0x515   : > { %598 = vmax.xlane.f32.xlu2 %v597_v35 }
 0x519   : > { %v544_v36 = vpop.f32.mrf.mxu3 }
 0x52a   : > { %v590_v37 = vpop.f32.mrf.mxu2 }
 0x52b   : > { %v603_v38 = vsel %vm502_vm7, %v590_v37, -inf }
 0x52c   : > { %v596_v39 = vpop.xlane.xlu1 %595  ;;  %604 = vmax.xlane.f32.xlu0 %v603_v38 }
 0x52d   : > { %v606_v40 = vsub.f32 %v518_v28, %v596_v39  ;;  %482 = vrot.lane.b32.xlu2 %v1154_v19, %s1026_s8 }
 0x52f   : > { %v610_v41 = vmul.f32 1.442695, %v606_v40 }
 0x531   : > { %942 = vpow2.f32 %v610_v41 }
 0x532   : > { %v592_v42 = vpop.f32.mrf.mxu2 }
 0x537   : > { %v943_v43 = vpop.eup %942 }
 0x538   : > { %v618_v44 = vsel %vm502_vm7, %v943_v43, 0.0 }
 0x539   : > { %619 = vadd.xlane.f32.xlu1 %v618_v44 }
 0x540   : > { %476 = vrot.lane.b32.xlu0 %v1154_v19, %s1025_s7  ;;  %s215_s7 = scalar_lea.vmem [#allocation2], %s836_s23 }
 0x541   : > { %s770_s8 = sshll.u32 %s215_s7, 4  ;;  %s771_s8 = int_to_ptr.vmem [resolvable:$true] %s770_s8 }
 0x544   : > { %v480_v57 = vpop.permute.xlu1 %479 }
 0x545   : > { %v495_v58 = vpack.c.bf16 %v480_v57, %v480_v57 }
 0x547   : > { %v692_v59 = vunpack.c.l.b16 %v495_v58 }
 0x548   : > { %645 = vrot.lane.b32.xlu0 %v644_v47, %s1027_s13 }
 0x549   : > { %v693_v0 = vpack.c.b16 %v692_v59, %v692_v59 }
 0x580   : > { %v602_v48 = vpop.xlane.xlu2 %601 }
 0x581   : > { %v608_v49 = vsub.f32 %v566_v31, %v602_v48 }
 0x583   : > { %v614_v50 = vmul.f32 1.442695, %v608_v49 }
 0x585   : > { %944 = vpow2.f32 %v614_v50 }
 0x588   : > { %v599_v51 = vpop.xlane.xlu2 %598 }
 0x589   : > { %v607_v52 = vsub.f32 %v542_v33, %v599_v51 }
 0x58b   : > { %v945_v53 = vpop.eup %944  ;;  %v612_v54 = vmul.f32 1.442695, %v607_v52 }
 0x58c   : > { %v624_v55 = vsel %vm502_vm7, %v945_v53, 0.0 }
 0x58d   : > { %946 = vpow2.f32 %v612_v54  ;;  %625 = vadd.xlane.f32.xlu2 %v624_v55 }
 0x590   : > { %v483_v62 = vpop.permute.xlu2 %482 }
 0x591   : > { %v496_v1 = vpack.c.bf16 %v483_v62, %v483_v62 }
 0x593   : > { %v947_v56 = vpop.eup %946  ;;  %v716_v2 = vunpack.c.l.b16 %v496_v1 }
 0x594   : > { %v621_v19 = vsel %vm502_vm7, %v947_v56, 0.0 }
 0x595   : > { %622 = vadd.xlane.f32.xlu1 %v621_v19  ;;  %v717_v5 = vpack.c.b16 %v716_v2, %v716_v2 }
 0x59f   : > { %v605_v60 = vpop.xlane.xlu0 %604 }
 0x5a0   : > { %v609_v61 = vsub.f32 %v590_v37, %v605_v60 }
 0x5a2   : > { %v616_v63 = vmul.f32 1.442695, %v609_v61 }
 0x5a4   : > { %948 = vpow2.f32 %v616_v63 }
 0x5a5   : > { %694 = vrot.lane.b32.xlu2 %v693_v0, %s1027_s13 }
 0x5aa   : > { %v949_v3 = vpop.eup %948 }
 0x5ab   : > { %v627_v4 = vsel %vm502_vm7, %v949_v3, 0.0 }
 0x5ac   : > { %628 = vadd.xlane.f32.xlu0 %v627_v4  ;;  %v620_v6 = vpop.xlane.xlu1 %619 }
 0x5ad   : > { %950 = vrcp.f32 %v620_v6 }
 0x5ae   : > { %718 = vrot.lane.b32.xlu1 %v717_v5, %s1027_s13 }
 0x5b2   : > { %v477_v7 = vpop.permute.xlu0 %476 }
 0x5b3   : > { %v951_v8 = vpop.eup %950  ;;  %v494_v9 = vpack.c.bf16 %v477_v7, %v477_v7 }
 0x5b4   : > { %v634_v10 = vmul.f32 %v951_v8, %v943_v43 }
 0x5b5   : > { %v668_v11 = vunpack.c.l.b16 %v494_v9 }
 0x5b6   : > { %v638_v14 = vpack.c.bf16 %v634_v10, %v634_v10 }
 0x5b7   : > { %v669_v15 = vpack.c.b16 %v668_v11, %v668_v11 }
 0x5ba   : > { %v646_v12 = vpop.permute.xlu0 %645 }
 0x5bb   : > { %v652_v13 = vsel %vm650_vm8, %v646_v12, 0 }
 0x5bc   : > { %661 = vmatpush.bf16.msra.mxu3 %v652_v13 }
 0x5bf   : > { %871 = vmatmul.msk.bf16.vlgmr.msra.gmra.mxu3 %vm502_vm7, %v638_v14 }
 0x5c0   : > { %670 = vrot.lane.b32.xlu0 %v669_v15, %s1027_s13 }
 0x600   : > { %v626_v16 = vpop.xlane.xlu2 %625 }
 0x601   : > { %952 = vrcp.f32 %v626_v16 }
 0x607   : > { %v953_v17 = vpop.eup %952 }
 0x608   : > { %v636_v18 = vmul.f32 %v953_v17, %v945_v53  ;;  %v695_v20 = vpop.permute.xlu2 %694  ;;  %v623_v23 = vpop.xlane.xlu1 %622 }
 0x609   : > { %v700_v21 = vsel %vm650_vm8, %v695_v20, 0 }
 0x60a   : > { %v640_v22 = vpack.c.bf16 %v636_v18, %v636_v18  ;;  %709 = vmatpush.bf16.msrb.mxu2 %v700_v21 }
 0x60d   : > { %873 = vmatmul.msk.bf16.vlgmr.msrb.gmra.mxu2 %vm502_vm7, %v640_v22 }
 0x61f   : > { %v629_v24 = vpop.xlane.xlu0 %628 }
 0x620   : > { %954 = vrcp.f32 %v629_v24  ;;  %v719_v25 = vpop.permute.xlu1 %718 }
 0x621   : > { %v724_v26 = vsel %vm650_vm8, %v719_v25, 0  ;;  %956 = vrcp.f32 %v623_v23 }
 0x622   : > { %733 = vmatpush.bf16.msrb.mxu3 %v724_v26 }
 0x626   : > { %v955_v27 = vpop.eup %954 }
 0x627   : > { %v637_v28 = vmul.f32 %v955_v27, %v949_v3  ;;  %v957_v30 = vpop.eup %956 }
 0x628   : > { %v635_v31 = vmul.f32 %v957_v30, %v947_v56 }
 0x629   : > { %v641_v29 = vpack.c.bf16 %v637_v28, %v637_v28 }
 0x62a   : > { %v639_v34 = vpack.c.bf16 %v635_v31, %v635_v31 }
 0x62b   : > { %874 = vmatmul.msk.bf16.vlgmr.msrb.gmra.mxu3 %vm502_vm7, %v641_v29 }
 0x632   : > { %v671_v32 = vpop.permute.xlu0 %670 }
 0x633   : > { %v676_v33 = vsel %vm650_vm8, %v671_v32, 0 }
 0x634   : > { %685 = vmatpush.bf16.msrb.mxu1 %v676_v33 }
 0x637   : > { %872 = vmatmul.msk.bf16.vlgmr.msrb.gmra.mxu1 %vm502_vm7, %v639_v34 }
 0x642   : > { %v663_v35 = vpop.f32.mrf.mxu3 }
 0x64a   : > { %v665_v36 = vpop.f32.mrf.mxu3 }
 0x690   : > { %v711_v37 = vpop.f32.mrf.mxu2 }
 0x691   : > { %744 = vrot.lane.b32.xlu0 %v711_v37, %s1028_s14  ;;  %s978_s14 = scalar_lea.hbm %s1263_s5, 16 }
 0x692   : > { %p980_p1 = scmp.lt.s32.totalorder %s978_s14, %s974_s11 }
 0x694   : > { %p981_p2 = por %p980_p1, %p979_p0 }
 0x696   : > { %p982_p3 = pnand %p981_p2, %p977_p13 }
 0x698   : > { %v713_v38 = vpop.f32.mrf.mxu2 }
 0x6ae   : > { %v735_v39 = vpop.f32.mrf.mxu3 }
 0x6af   : > { %748 = vrot.lane.b32.xlu1 %v735_v39, %s1029_s15 }
 0x6b4   : > { %v687_v40 = vpop.f32.mrf.mxu1 }
 0x6b5   : > { %740 = vrot.lane.b32.xlu2 %v687_v40, %s1030_s16 }
 0x6b6   : > { %v737_v41 = vpop.f32.mrf.mxu3 }
 0x6bc   : > { %v689_v42 = vpop.f32.mrf.mxu1 }
 0x703   : > { %v745_v45 = vpop.permute.xlu0 %744 }
 0x70f   : > { %v741_v43 = vpop.permute.xlu2 %740 }
 0x710   : > { %v751_v44 = vsel %vm502_vm7, %v663_v35, %v741_v43 }
 0x711   : > { %v753_v47 = vsel %vm752_vm9, %v751_v44, %v745_v45 }
 0x721   : > { %v749_v46 = vpop.permute.xlu1 %748 }
 0x722   : > { %v755_v48 = vsel %vm754_vm10, %v753_v47, %v749_v46 }
 0x723   : > { %756 = vst.msk [vmem:[%s215_s7] sm:$0xff] %vm268_vm0, %v755_v48 }
 0x724   : > { %985 = shalt.err (!%p982_p3)
}
 0x725   : > { %885 = dma.vmem_to_hbm [thread:$0]  (%p1099_p5), %s771_s8, 128, %s773_s9, %s758_s22  }
 0x726 PF: > { %p891_p4 = scmp.ge.s32.totalorder %s1020_s21, 2  ;;  %s784_s17 = sand.u32 1, %s1008_s18  }
 0x727   : > { %s785_s23 = scalar_lea.sflag [#allocation3], %s784_s17 }
 0x728   : > { %p888_p7 = pnand %p891_p4, %p1103_p6 }
 0x72a   : > { %p889_p8 = pneg %p888_p7 }
 0x72c   : > { %1003 = dma.done.wait (%p889_p8), %s785_s23, 128  }
 0x72d   : > { %1005 = vsyncadd (%p889_p8), %s785_s23, 4294967168  ;;  %p15_p9 = scmp.ge.s32.totalorder %s1086_s24, 4   ;;  %s1266_s18 = smov %s1012_s19 }
 0x72e   : > { %s1267_s19 = smov %s1016_s20  ;;  %s1268_s20 = smov %s1097_s27 }
 0x72f   : > { %s1269_s21 = smov %s1086_s24  ;;  %17 = sbr.rel (!%p15_p9) target bundleno = 3 (0x3), region = 75 }
 0x734   :  { %791 = vsyncpa [#allocation3], 1 }
 0x735   :  { %793 = vsyncpa [#allocation3 + $0x1], 1 }

</bundles_post_ra>
